<compile_context>
chip_gen: v6e
topology: v6e:2x2x1
jax: 0.10.0
libtpu: 0.0.40
codegen_flags: <defaults>
</compile_context>

<pallas_src>
import jax
import jax.numpy as jnp
from jax.experimental import pallas as pl
from jax.experimental.pallas import tpu as pltpu


PACK = 4                 # output pixels packed per matmul row
KPAD = 32                # per-pixel contraction 3*3*3=27, zero-padded to 32
COUT = 64                # conv1 output channels
K_PACKED = PACK * KPAD   # 128 lanes on the input / contraction dim
N_PACKED = PACK * COUT   # 256 lanes on the output dim


def _round_up(x, m):
    return ((x + m - 1) // m) * m


def conv_matmul_kernel(col_ref, w_ref, o_ref):
    """One lane-dense MXU matmul per row tile.

    col_ref : (tm, 128)  bf16   packed im2col rows (4 pixels x padded 32-K)
    w_ref   : (128, 256) bf16   block-diagonal conv weight
    o_ref   : (tm, 256)  f32    4 packed pixels x 64 output channels
    """
    o_ref[...] = jnp.dot(col_ref[...], w_ref[...],
                         preferred_element_type=jnp.float32)


def angnet_forward(x_nchw, weight, *, block_rows=256):
    """Apply conv1 (Conv2d(3, 64, k=3, pad=1, bias=False)).

    x_nchw : (N, 3, H, W)  float32, PyTorch NCHW convention
    weight : (64, 3, 3, 3) float32, PyTorch OIHW convention
    returns: (N, 64, H, W) float32
    """
    N, Cin, H, W = x_nchw.shape
    Cout = weight.shape[0]
    assert (Cin, weight.shape[2], weight.shape[3]) == (3, 3, 3) and Cout == COUT

    # ---- im2col in the wrapper (XLA) so the kernel sees dense 128-lane rows.
    x_nhwc = jnp.transpose(x_nchw, (0, 2, 3, 1))                  # NCHW -> NHWC
    x_pad = jnp.pad(x_nhwc, ((0, 0), (1, 1), (1, 1), (0, 0)))     # SAME pad k=3
    patches = [x_pad[:, dh:dh + H, dw:dw + W, :]
               for dh in range(3) for dw in range(3)]
    # channel order (dh, dw, cin) -- matches the weight flattening below.
    col = jnp.concatenate(patches, axis=-1).reshape(N * H * W, 27)

    # Zero-pad K 27 -> 32, pad the row count, pack PACK pixels per 128-lane row.
    pixels = N * H * W
    rows_min = -(-pixels // PACK)
    tm = _round_up(min(block_rows, rows_min), 16)     # bf16 sublane granularity
    rows = _round_up(rows_min, tm)
    col = jnp.pad(col, ((0, rows * PACK - pixels), (0, KPAD - 27)))
    col_packed = col.reshape(rows, K_PACKED).astype(jnp.bfloat16)

    # Weight: OIHW -> (kh, kw, cin, cout) -> (27, 64), zero-pad K, and lay out
    # block-diagonally so one (rows,128)@(128,256) matmul = 4 per-pixel convs.
    w27 = jnp.transpose(weight, (2, 3, 1, 0)).reshape(27, Cout)
    w32 = jnp.pad(w27, ((0, KPAD - 27), (0, 0)))
    w_bd = jnp.zeros((K_PACKED, N_PACKED), dtype=weight.dtype)
    for j in range(PACK):
        w_bd = w_bd.at[j * KPAD:(j + 1) * KPAD,
                       j * Cout:(j + 1) * Cout].set(w32)
    w_bd = w_bd.astype(jnp.bfloat16)

    grid = (rows // tm,)
    cost = pl.CostEstimate(
        flops=2 * rows * K_PACKED * N_PACKED,
        transcendentals=0,
        bytes_accessed=(col_packed.size * 2 + w_bd.size * 2
                        + rows * N_PACKED * 4))

    out_packed = pl.pallas_call(
        conv_matmul_kernel,
        out_shape=jax.ShapeDtypeStruct((rows, N_PACKED), jnp.float32),
        grid=grid,
        in_specs=[
            pl.BlockSpec((tm, K_PACKED), lambda i: (i, 0)),
            pl.BlockSpec((K_PACKED, N_PACKED), lambda i: (0, 0)),  # resident
        ],
        out_specs=pl.BlockSpec((tm, N_PACKED), lambda i: (i, 0)),
        compiler_params=pltpu.CompilerParams(
            dimension_semantics=("parallel",)),   # v7x: shard tiles over 2 TCs
        cost_estimate=cost,
    )(col_packed, w_bd)

    # Unpack: (rows, 4*64) -> (pixels, 64) -> NHWC -> NCHW.
    out_flat = out_packed.reshape(rows * PACK, Cout)[:pixels]
    out_nhwc = out_flat.reshape(N, H, W, Cout)
    return jnp.transpose(out_nhwc, (0, 3, 1, 2))


if __name__ == "__main__":
    key = jax.random.PRNGKey(0)
    k_x, k_w = jax.random.split(key)

    # Small shapes consistent with Conv2d(3, 64, 3, padding=1): N=2, H=W=16.
    N, Cin, H, W, Cout = 2, 3, 16, 16, 64
    x = jax.random.normal(k_x, (N, Cin, H, W), dtype=jnp.float32)

    # Deterministic Kaiming-uniform-like init (same shape as PyTorch OIHW).
    fan_in = Cin * 3 * 3
    bound = (1.0 / fan_in) ** 0.5
    weight = jax.random.uniform(k_w, (Cout, Cin, 3, 3), dtype=jnp.float32,
                                minval=-bound, maxval=bound)

    # block_rows=64 packed rows (= 256 output pixels / tile) so the small demo
    # exercises a multi-step grid; production sizes use the default 256+.
    fwd = jax.jit(lambda xx, ww: angnet_forward(xx, ww, block_rows=64))
    out = jax.block_until_ready(fwd(x, weight))

    # Reference: XLA conv on the same bf16-rounded operands (the kernel feeds
    # bf16 into the MXU and accumulates in f32, so this is the exact spec).
    x_r = x.astype(jnp.bfloat16).astype(jnp.float32)
    w_r = weight.astype(jnp.bfloat16).astype(jnp.float32)
    ref = jax.lax.conv_general_dilated(
        x_r, w_r, window_strides=(1, 1), padding="SAME",
        dimension_numbers=("NCHW", "OIHW", "NCHW"),
        precision=jax.lax.Precision.HIGHEST)
    assert out.shape == (N, Cout, H, W)
    assert jnp.allclose(out, ref, atol=1e-4, rtol=1e-4)

    print("KERNEL_OK")
</pallas_src>

<mosaic_0001>
module attributes {stable_mosaic.version = 11 : i64} {
  func.func @conv_matmul_kernel(%arg0: i32, %arg1: memref<64x128xbf16, #tpu.memory_space<vmem>>, %arg2: memref<128x256xbf16, #tpu.memory_space<vmem>>, %arg3: memref<64x256xf32, #tpu.memory_space<vmem>>) attributes {dimension_semantics = [#tpu.dimension_semantics<parallel>], iteration_bounds = array<i64: 2>, scalar_prefetch = 0 : i64, scratch_operands = 0 : i64, tpu.core_type = #tpu.core_type<tc>, window_params = [{transform_indices = @transform_0, window_bounds = array<i64: 64, 128>}, {pipeline_mode = #tpu.pipeline_mode<synchronous>, transform_indices = @transform_1, window_bounds = array<i64: 128, 256>}, {transform_indices = @transform_2, window_bounds = array<i64: 64, 256>}]} {
    %c0 = arith.constant 0 : index
    %c0_0 = arith.constant 0 : index
    %0 = vector.load %arg1[%c0, %c0_0] : memref<64x128xbf16, #tpu.memory_space<vmem>>, vector<64x128xbf16>
    %c0_1 = arith.constant 0 : index
    %c0_2 = arith.constant 0 : index
    %1 = vector.load %arg2[%c0_1, %c0_2] : memref<128x256xbf16, #tpu.memory_space<vmem>>, vector<128x256xbf16>
    %cst = arith.constant dense<0.000000e+00> : vector<64x256xf32>
    %2 = tpu.matmul %0, %1, %cst {dimension_numbers = #tpu.dot_dimension_numbers<[1], [0], [0], [1], [0, 0, 1, 1], [], []>} : vector<64x128xbf16>, vector<128x256xbf16>, vector<64x256xf32> -> vector<64x256xf32>
    %c0_3 = arith.constant 0 : index
    %c0_4 = arith.constant 0 : index
    %3 = vector.load %arg3[%c0_3, %c0_4] : memref<64x256xf32, #tpu.memory_space<vmem>>, vector<64x256xf32>
    tpu.vector_store %arg3[%c0_3, %c0_4], %2 {strides = array<i32>} : memref<64x256xf32, #tpu.memory_space<vmem>>, vector<64x256xf32>,
    return
  }
  func.func @transform_0(%arg0: i32) -> (i32, i32) {
    %c0_i32 = arith.constant 0 : i32
    %c0_i32_0 = arith.constant 0 : i32
    return %arg0, %c0_i32 : i32, i32
  }
  func.func @transform_1(%arg0: i32) -> (i32, i32) {
    %c0_i32 = arith.constant 0 : i32
    %c0_i32_0 = arith.constant 0 : i32
    %c0_i32_1 = arith.constant 0 : i32
    return %c0_i32, %c0_i32_0 : i32, i32
  }
  func.func @transform_2(%arg0: i32) -> (i32, i32) {
    %c0_i32 = arith.constant 0 : i32
    %c0_i32_0 = arith.constant 0 : i32
    return %arg0, %c0_i32 : i32, i32
  }
}

</mosaic_0001>

<bundles_post_ra>
// kernel: _lambda_.1
= control target key start
LH: loop header
LB: loop body
LE: loop exit
PB: predicated region body
PF: predicated region fallthrough
CT: control target
= control target key end

     0   :  { %s535_s9 = smov 0   ;;  %s628_s0 = inlined_call_operand.vmem [shape: bf16[128,128], index: 0, kind: input, shape index: {}]   ;;  %s629_s1 = inlined_call_operand.vmem [shape: bf16[128,256], index: 1, kind: input, shape index: {}]   ;;  %s630_s2 = inlined_call_operand.vmem [shape: f32[128,256], index: 2, kind: output, shape index: {}]  }
   0x1 LB: > { %s425_s10 = sadd.s32 4294967295, %s517_s9   ;;  %p429_p0 = scmp.ge.s32.totalorder %s517_s9, 1  ;;  %s517_s9 = sphi %s535_s9, %s12_s9  }
   0x2   : > { %p113_p1 = scmp.lt.s32.totalorder %s517_s9, 3 }
   0x4   : > { %p114_p2 = pnand %p429_p0, %p113_p1 }
   0x5   : > { %s430_s13 = sshll.u32 (!%p114_p2), %s425_s10, 3 }
   0x6   : > { %117 = sbr.rel (%p114_p2) target bundleno = 253 (0xfd), region = 28  ;;  %p137_p3 = scmp.lt.s32.totalorder (!%p114_p2), %s430_s13, 15 }
   0xb   : > { %v483_v0 = vld [vmem:[%s629_s1 + $0x74] ss:$8 sps:$4 sm:$0xff]   ;;  %v485_v1 = vld [vmem:[%s629_s1 + $0x70] ss:$8 sps:$4 sm:$0xff]   ;;  %v519_v2 = vmov 0   ;;  %s632_s13 = smov (!%p137_p3, %s430_s13), 15 }
   0xc   : > { %310 = vmatprep.mubr.bf16.mxu0 %v519_v2  ;;  %330 = vmatprep.mubr.bf16.mxu1 %v519_v2  ;;  %v486_v3 = vld [vmem:[%s629_s1 + $0x64] ss:$8 sps:$4 sm:$0xff]   ;;  %v488_v4 = vld [vmem:[%s629_s1 + $0x60] ss:$8 sps:$4 sm:$0xff]   ;;  %v489_v5 = vld [vmem:[%s629_s1 + $0x54] ss:$8 sps:$4 sm:$0xff]  }
   0xd   : > { %278 = vmatprep.subr.bf16.mxu0 %v483_v0  ;;  %458 = vmatprep.subr.bf16.mxu1 %v483_v0  ;;  %s431_s22 = sshll.u32 %s632_s13, 2  ;;  %v491_v6 = vld [vmem:[%s629_s1 + $0x50] ss:$8 sps:$4 sm:$0xff]   ;;  %v492_v7 = vld [vmem:[%s629_s1 + $0x44] ss:$8 sps:$4 sm:$0xff]  }
   0xe   : > { %279 = vmatpush1.bf16.msra.mxu0 %v485_v1  ;;  %466 = vmatpush1.bf16.msra.mxu1 %v485_v1  ;;  %s570_s29 = scalar_lea.vmem %s628_s0, %s431_s22  ;;  %v494_v8 = vld [vmem:[%s629_s1 + $0x40] ss:$8 sps:$4 sm:$0xff]   ;;  %v495_v9 = vld [vmem:[%s629_s1 + $0x34] ss:$8 sps:$4 sm:$0xff]   ;;  %v497_v10 = vld [vmem:[%s629_s1 + $0x30] ss:$8 sps:$4 sm:$0xff]  }
   0xf   : > { %280 = vmatprep.subr.bf16.mxu0 %v486_v3  ;;  %459 = vmatprep.subr.bf16.mxu1 %v486_v3  ;;  %v498_v11 = vld [vmem:[%s629_s1 + $0x24] ss:$8 sps:$4 sm:$0xff]   ;;  %v500_v12 = vld [vmem:[%s629_s1 + $0x20] ss:$8 sps:$4 sm:$0xff]   ;;  %v501_v13 = vld [vmem:[%s629_s1 + $0x14] ss:$8 sps:$4 sm:$0xff]  }
  0x10   : > { %v503_v14 = vld [vmem:[%s629_s1 + $0x10] ss:$8 sps:$4 sm:$0xff]   ;;  %v504_v15 = vld [vmem:[%s629_s1 + $0x4] ss:$8 sps:$4 sm:$0xff]   ;;  %v506_v16 = vld [vmem:[%s629_s1] ss:$8 sps:$4 sm:$0xff]  }
  0x11   : > { %v507_v17 = vld [vmem:[%s570_s29] sm:$0xff]   ;;  %v508_v18 = vld [vmem:[%s570_s29 + $0x10] sm:$0xff]   ;;  %v509_v19 = vld [vmem:[%s570_s29 + $0x8] sm:$0xff]   ;;  %s457_s22 = sshll.u32 %s632_s13, 4 }
  0x12   : > { %281 = vmatpush1.bf16.msra.mxu0 %v488_v4  ;;  %467 = vmatpush1.bf16.msra.mxu1 %v488_v4  ;;  %v510_v20 = vld [vmem:[%s570_s29 + $0x18] sm:$0xff]   ;;  %s607_s25 = scalar_lea.vmem %s630_s2, %s457_s22 }
  0x13   : > { %282 = vmatprep.subr.bf16.mxu0 %v489_v5  ;;  %460 = vmatprep.subr.bf16.mxu1 %v489_v5 }
  0x16   : > { %283 = vmatpush1.bf16.msra.mxu0 %v491_v6  ;;  %468 = vmatpush1.bf16.msra.mxu1 %v491_v6 }
  0x17   : > { %284 = vmatprep.subr.bf16.mxu0 %v492_v7  ;;  %461 = vmatprep.subr.bf16.mxu1 %v492_v7 }
  0x1a   : > { %285 = vmatpush1.bf16.msra.mxu0 %v494_v8  ;;  %469 = vmatpush1.bf16.msra.mxu1 %v494_v8 }
  0x1b   : > { %286 = vmatprep.subr.bf16.mxu0 %v495_v9  ;;  %462 = vmatprep.subr.bf16.mxu1 %v495_v9 }
  0x1e   : > { %287 = vmatpush1.bf16.msra.mxu0 %v497_v10  ;;  %470 = vmatpush1.bf16.msra.mxu1 %v497_v10 }
  0x1f   : > { %288 = vmatprep.subr.bf16.mxu0 %v498_v11  ;;  %463 = vmatprep.subr.bf16.mxu1 %v498_v11 }
  0x22   : > { %289 = vmatpush1.bf16.msra.mxu0 %v500_v12  ;;  %471 = vmatpush1.bf16.msra.mxu1 %v500_v12 }
  0x23   : > { %290 = vmatprep.subr.bf16.mxu0 %v501_v13  ;;  %464 = vmatprep.subr.bf16.mxu1 %v501_v13 }
  0x26   : > { %291 = vmatpush1.bf16.msra.mxu0 %v503_v14  ;;  %472 = vmatpush1.bf16.msra.mxu1 %v503_v14 }
  0x27   : > { %292 = vmatprep.subr.bf16.mxu0 %v504_v15  ;;  %465 = vmatprep.subr.bf16.mxu1 %v504_v15 }
  0x2a   : > { %293 = vmatpush1.bf16.msra.mxu0 %v506_v16  ;;  %473 = vmatpush1.bf16.msra.mxu1 %v506_v16 }
  0x2d   : > { %311 = vmatmul.mubr.bf16.vlgmr.msra.gmra.mxu0 %v507_v17  ;;  %331 = vmatmul.mubr.bf16.vlgmr.msra.gmra.mxu1 %v508_v18 }
  0x2e   : > { %320 = vmatprep.mubr.bf16.mxu0 %v519_v2  ;;  %340 = vmatprep.mubr.bf16.mxu1 %v519_v2 }
  0x35   : > { %321 = vmatmul.mubr.bf16.gmra.mxu0 %v509_v19  ;;  %341 = vmatmul.mubr.bf16.gmra.mxu1 %v510_v20 }
  0xed   : > { %v312_v21 = vpop.f32.mrf.mxu0  ;;  %v332_v22 = vpop.f32.mrf.mxu1 }
  0xee   : > { %351 = vst [vmem:[%s607_s25] sm:$0xff] %v312_v21  ;;  %359 = vst [vmem:[%s607_s25 + $0x40] sm:$0xff] %v332_v22 }
  0xef   : > { %v314_v23 = vpop.f32.mrf.mxu0  ;;  %v334_v24 = vpop.f32.mrf.mxu1 }
  0xf0   : > { %352 = vst [vmem:[%s607_s25 + $0x8] sm:$0xff] %v314_v23  ;;  %360 = vst [vmem:[%s607_s25 + $0x48] sm:$0xff] %v334_v24 }
  0xf1   : > { %v316_v25 = vpop.f32.mrf.mxu0  ;;  %v336_v26 = vpop.f32.mrf.mxu1 }
  0xf2   : > { %353 = vst [vmem:[%s607_s25 + $0x10] sm:$0xff] %v316_v25  ;;  %361 = vst [vmem:[%s607_s25 + $0x50] sm:$0xff] %v336_v26 }
  0xf3   : > { %v318_v27 = vpop.f32.mrf.mxu0  ;;  %v338_v28 = vpop.f32.mrf.mxu1 }
  0xf4   : > { %354 = vst [vmem:[%s607_s25 + $0x18] sm:$0xff] %v318_v27  ;;  %362 = vst [vmem:[%s607_s25 + $0x58] sm:$0xff] %v338_v28 }
  0xf5   : > { %v322_v29 = vpop.f32.mrf.mxu0  ;;  %v342_v30 = vpop.f32.mrf.mxu1 }
  0xf6   : > { %355 = vst [vmem:[%s607_s25 + $0x20] sm:$0xff] %v322_v29  ;;  %363 = vst [vmem:[%s607_s25 + $0x60] sm:$0xff] %v342_v30 }
  0xf7   : > { %v324_v31 = vpop.f32.mrf.mxu0  ;;  %v344_v32 = vpop.f32.mrf.mxu1 }
  0xf8   : > { %356 = vst [vmem:[%s607_s25 + $0x28] sm:$0xff] %v324_v31  ;;  %364 = vst [vmem:[%s607_s25 + $0x68] sm:$0xff] %v344_v32 }
  0xf9   : > { %v326_v33 = vpop.f32.mrf.mxu0  ;;  %v346_v34 = vpop.f32.mrf.mxu1 }
  0xfa   : > { %357 = vst [vmem:[%s607_s25 + $0x30] sm:$0xff] %v326_v33  ;;  %365 = vst [vmem:[%s607_s25 + $0x70] sm:$0xff] %v346_v34 }
  0xfb   : > { %v328_v35 = vpop.f32.mrf.mxu0  ;;  %v348_v36 = vpop.f32.mrf.mxu1 }
  0xfc   : > { %358 = vst [vmem:[%s607_s25 + $0x38] sm:$0xff] %v328_v35  ;;  %366 = vst [vmem:[%s607_s25 + $0x78] sm:$0xff] %v348_v36 }
  0xfd PF: > { %s12_s9 = sadd.s32 1, %s517_s9  }
  0xfe   : > { %p9_p4 = scmp.ge.s32.totalorder %s12_s9, 4  }
 0x100   :  { %11 = sbr.rel (!%p9_p4) target bundleno = 1 (0x1), region = 58 }

</bundles_post_ra>
